<compile_context>
chip_gen: v7x
topology: tpu7x:2x2x1
jax: 0.10.0
libtpu: 0.0.40
codegen_flags: <defaults>
</compile_context>

<pallas_src>
import jax
import jax.numpy as jnp
from jax.experimental import pallas as pl
from jax.experimental.pallas import tpu as pltpu


def _row_sq_diff_sum_kernel(pred_ref, gt_ref, out_ref):
    # pred_ref/gt_ref: (Rt, HW) VMEM (native dtype); out_ref: (Rt, 1) f32 VMEM.
    p = pred_ref[...].astype(jnp.float32)
    g = gt_ref[...].astype(jnp.float32)
    d = p - g
    out_ref[...] = jnp.sum(d * d, axis=1, keepdims=True)


def _pick_row_tile(rows, hw, itemsize, max_block_bytes=2 * 1024 * 1024):
    """Largest multiple-of-8 divisor of `rows` whose (rt, hw) block fits the
    budget; falls back to the full-array block when rows isn't 8-divisible."""
    if rows % 8 != 0:
        return rows  # full dim -> (8,128) rule satisfied as full-array block
    candidates = [d for d in range(8, rows + 1, 8) if rows % d == 0]
    fitting = [d for d in candidates if d * hw * itemsize <= max_block_bytes]
    return max(fitting) if fitting else min(candidates)


def joints_mse_loss(output, target, target_weight=None, use_target_weight=True):
    """output, target: (B, J, H, W). target_weight: (B, J, 1) (or (B, J))."""
    B, J, H, W = output.shape
    HW = H * W
    rows = B * J

    # Contiguous reshape only -- no transpose, no dtype-cast copy in HBM.
    pred = output.reshape(rows, HW)
    gt = target.reshape(rows, HW)

    rt = _pick_row_tile(rows, HW, jnp.dtype(pred.dtype).itemsize)
    grid = (rows // rt,)

    # Per-(b, j) sums of squared differences.  Each grid step writes its own
    # disjoint output block -> safe to mark the axis "parallel".
    s = pl.pallas_call(
        _row_sq_diff_sum_kernel,
        out_shape=jax.ShapeDtypeStruct((rows, 1), jnp.float32),
        grid=grid,
        in_specs=[
            pl.BlockSpec((rt, HW), lambda i: (i, 0)),
            pl.BlockSpec((rt, HW), lambda i: (i, 0)),
        ],
        out_specs=pl.BlockSpec((rt, 1), lambda i: (i, 0)),
        compiler_params=pltpu.CompilerParams(
            dimension_semantics=("parallel",)),
    )(pred, gt)

    s = s.reshape(B, J)
    if use_target_weight and target_weight is not None:
        w = target_weight.reshape(B, J).astype(jnp.float32)
        s = s * (w * w)

    # (1/J) * sum_j 0.5 * (1/(B*HW)) * sum_b w^2 * S
    return 0.5 * jnp.sum(s) / (jnp.float32(B) * jnp.float32(HW) * jnp.float32(J))


def pose_co_loss(output, target, target_weight, meta=None, use_target_weight=True):
    """JAX equivalent of PoseCoLoss.forward."""
    if isinstance(target, (list, tuple)):
        sup_target, unsup_target = target
        sup_target_weight, unsup_target_weight = target_weight
    else:
        sup_target = target
        sup_target_weight = target_weight
        unsup_target_weight = target_weight

    (sup_ht1, sup_ht2, unsup_ht1, unsup_ht2,
     unsup_ht_trans1, unsup_ht_trans2, cons_ht1, cons_ht2, out_dic) = output

    loss_pose = 0.5 * joints_mse_loss(sup_ht1, sup_target, sup_target_weight,
                                      use_target_weight)
    loss_pose = loss_pose + 0.5 * joints_mse_loss(sup_ht2, sup_target,
                                                  sup_target_weight,
                                                  use_target_weight)

    trans2 = jax.lax.stop_gradient(unsup_ht_trans2)
    trans1 = jax.lax.stop_gradient(unsup_ht_trans1)
    loss_cons = joints_mse_loss(cons_ht1, trans2, unsup_target_weight,
                                use_target_weight)
    loss_cons = loss_cons + joints_mse_loss(cons_ht2, trans1,
                                            unsup_target_weight,
                                            use_target_weight)

    # TODO(synk): PyTorch does .detach().cpu() here; JAX has no in-graph host
    # transfer -- we return stop-gradient'ed device arrays instead.
    pseudo_target = [trans2, trans1]

    loss = loss_pose + loss_cons
    loss_dic = {"loss_pose": loss_pose, "loss_cons": loss_cons}
    return loss, loss_dic, pseudo_target


# ------------------------- pure-JAX references -------------------------------

def _reference_joints_mse(output, target, target_weight, use_target_weight=True):
    B, J, H, W = output.shape
    pred = output.reshape(B, J, H * W).astype(jnp.float32)
    gt = target.reshape(B, J, H * W).astype(jnp.float32)
    loss = 0.0
    for idx in range(J):
        p = pred[:, idx, :]
        g = gt[:, idx, :]
        if use_target_weight:
            wj = target_weight[:, idx]          # (B, 1)
            p = p * wj
            g = g * wj
        loss = loss + 0.5 * jnp.mean((p - g) ** 2)
    return loss / J


if __name__ == "__main__":
    key = jax.random.PRNGKey(0)
    keys = jax.random.split(key, 12)

    B, J, H, W = 2, 4, 16, 16
    shape = (B, J, H, W)

    sup_ht1 = jax.random.normal(keys[0], shape, dtype=jnp.float32)
    sup_ht2 = jax.random.normal(keys[1], shape, dtype=jnp.float32)
    unsup_ht1 = jax.random.normal(keys[2], shape, dtype=jnp.float32)
    unsup_ht2 = jax.random.normal(keys[3], shape, dtype=jnp.float32)
    unsup_ht_trans1 = jax.random.normal(keys[4], shape, dtype=jnp.float32)
    unsup_ht_trans2 = jax.random.normal(keys[5], shape, dtype=jnp.float32)
    cons_ht1 = jax.random.normal(keys[6], shape, dtype=jnp.float32)
    cons_ht2 = jax.random.normal(keys[7], shape, dtype=jnp.float32)
    sup_target = jax.random.normal(keys[8], shape, dtype=jnp.float32)
    unsup_target = jax.random.normal(keys[9], shape, dtype=jnp.float32)
    sup_tw = jax.random.uniform(keys[10], (B, J, 1), dtype=jnp.float32)
    unsup_tw = jax.random.uniform(keys[11], (B, J, 1), dtype=jnp.float32)

    model_output = (sup_ht1, sup_ht2, unsup_ht1, unsup_ht2,
                    unsup_ht_trans1, unsup_ht_trans2, cons_ht1, cons_ht2, {})

    loss, loss_dic, pseudo_target = pose_co_loss(
        model_output, [sup_target, unsup_target], [sup_tw, unsup_tw], meta=None)
    loss = jax.block_until_ready(loss)

    # Reference (pure JAX, mirrors the PyTorch module).
    ref_pose = (0.5 * _reference_joints_mse(sup_ht1, sup_target, sup_tw)
                + 0.5 * _reference_joints_mse(sup_ht2, sup_target, sup_tw))
    ref_cons = (_reference_joints_mse(cons_ht1, unsup_ht_trans2, unsup_tw)
                + _reference_joints_mse(cons_ht2, unsup_ht_trans1, unsup_tw))
    ref_loss = ref_pose + ref_cons

    assert jnp.allclose(loss, ref_loss, rtol=1e-5, atol=1e-6), (loss, ref_loss)
    assert jnp.allclose(loss_dic["loss_pose"], ref_pose, rtol=1e-5, atol=1e-6)
    assert jnp.allclose(loss_dic["loss_cons"], ref_cons, rtol=1e-5, atol=1e-6)

    print("KERNEL_OK")
</pallas_src>

<mosaic_0001>
module attributes {stable_mosaic.version = 11 : i64} {
  func.func @_row_sq_diff_sum_kernel(%arg0: i32, %arg1: memref<8x256xf32, #tpu.memory_space<vmem>>, %arg2: memref<8x256xf32, #tpu.memory_space<vmem>>, %arg3: memref<8x1xf32, #tpu.memory_space<vmem>>) attributes {dimension_semantics = [#tpu.dimension_semantics<parallel>], iteration_bounds = array<i64: 1>, scalar_prefetch = 0 : i64, scratch_operands = 0 : i64, tpu.core_type = #tpu.core_type<tc>, window_params = [{transform_indices = @transform_0, window_bounds = array<i64: 8, 256>}, {transform_indices = @transform_1, window_bounds = array<i64: 8, 256>}, {transform_indices = @transform_2, window_bounds = array<i64: 8, 1>}]} {
    %c0 = arith.constant 0 : index
    %c0_0 = arith.constant 0 : index
    %0 = vector.load %arg1[%c0, %c0_0] : memref<8x256xf32, #tpu.memory_space<vmem>>, vector<8x256xf32>
    %c0_1 = arith.constant 0 : index
    %c0_2 = arith.constant 0 : index
    %1 = vector.load %arg2[%c0_1, %c0_2] : memref<8x256xf32, #tpu.memory_space<vmem>>, vector<8x256xf32>
    %2 = arith.subf %0, %1 : vector<8x256xf32>
    %3 = arith.mulf %2, %2 : vector<8x256xf32>
    %cst = arith.constant dense<0.000000e+00> : vector<8xf32>
    %4 = vector.multi_reduction <add>, %3, %cst [1] : vector<8x256xf32> to vector<8xf32>
    %5 = vector.shape_cast %4 : vector<8xf32> to vector<8x1xf32>
    %c0_3 = arith.constant 0 : index
    %c0_4 = arith.constant 0 : index
    %6 = vector.load %arg3[%c0_3, %c0_4] : memref<8x1xf32, #tpu.memory_space<vmem>>, vector<8x1xf32>
    tpu.vector_store %arg3[%c0_3, %c0_4], %5 {strides = array<i32>} : memref<8x1xf32, #tpu.memory_space<vmem>>, vector<8x1xf32>,
    return
  }
  func.func @transform_0(%arg0: i32) -> (i32, i32) {
    %c0_i32 = arith.constant 0 : i32
    %c0_i32_0 = arith.constant 0 : i32
    return %arg0, %c0_i32 : i32, i32
  }
  func.func @transform_1(%arg0: i32) -> (i32, i32) {
    %c0_i32 = arith.constant 0 : i32
    %c0_i32_0 = arith.constant 0 : i32
    return %arg0, %c0_i32 : i32, i32
  }
  func.func @transform_2(%arg0: i32) -> (i32, i32) {
    %c0_i32 = arith.constant 0 : i32
    %c0_i32_0 = arith.constant 0 : i32
    return %arg0, %c0_i32 : i32, i32
  }
}

</mosaic_0001>

<bundles_post_ra>
// kernel: tpu_custom_call.1
= control target key start
LH: loop header
LB: loop body
LE: loop exit
PB: predicated region body
PF: predicated region fallthrough
CT: control target
= control target key end

     0   :  { %7 = vsyncpa [#allocation3], 0  ;;  %s148_s0 = inlined_call_operand.hbm [shape: f32[8,256], index: 0, kind: input, shape index: {}]   ;;  %s149_s1 = inlined_call_operand.hbm [shape: f32[8,256], index: 1, kind: input, shape index: {}]   ;;  %s150_s2 = inlined_call_operand.vmem [shape: f32[8,1], index: 2, kind: output, shape index: {}]  }
   0x1   :  { %8 = vsyncpa [#allocation5], 0  ;;  %s104_s9 = smov [#allocation2]   ;;  %s105_s11 = smov [#allocation4]  }
   0x2   :  { %s15_s10 = sshll.u32 %s104_s9, 4  ;;  %s25_s12 = sshll.u32 %s105_s11, 4  ;;  %s16_s10 = int_to_ptr.vmem [resolvable:$true] %s15_s10  ;;  %s26_s12 = int_to_ptr.vmem [resolvable:$true] %s25_s12 }
   0x3   :  { %s56_s15 = scalar_lea.hbm %s148_s0, 256 }
   0x4   :  { %p57_p0 = scmp.ne.s32.totalorder %s148_s0, %s56_s15  ;;  %p60_p1 = scmp.lt.u32.totalorder %s56_s15, %s148_s0 }
   0x6   :  { %p62_p2 = pnand %p60_p1, %p57_p0 }
   0x8   :  { %65 = shalt.err (!%p62_p2)
}
   0x9   :  { %s66_s20 = scalar_lea.vmem %s16_s10, 256  ;;  %p71_p4 = scmp.lt.s32.totalorder %s16_s10, %s16_s10 }
   0xa   :  { %p67_p3 = scmp.ne.s32.totalorder %s16_s10, %s66_s20  ;;  %p72_p5 = scmp.lt.s32.totalorder %s66_s20, %s66_s20 }
   0xc   :  { %p73_p6 = por %p72_p5, %p71_p4 }
   0xe   :  { %p74_p7 = pnand %p73_p6, %p67_p3 }
  0x10   :  { %77 = shalt.err (!%p74_p7)
}
  0x11   :  { %18 = dma.hbm_to_vmem [thread:$0]  %s148_s0, 256, %s16_s10, [#allocation3]  }
  0x12   :  { %s78_s25 = scalar_lea.hbm %s149_s1, 256 }
  0x13   :  { %p79_p8 = scmp.ne.s32.totalorder %s149_s1, %s78_s25  ;;  %p82_p9 = scmp.lt.u32.totalorder %s78_s25, %s149_s1 }
  0x15   :  { %p84_p10 = pnand %p82_p9, %p79_p8 }
  0x17   :  { %87 = shalt.err (!%p84_p10)
}
  0x18   :  { %s88_s30 = scalar_lea.vmem %s26_s12, 256  ;;  %p93_p12 = scmp.lt.s32.totalorder %s26_s12, %s26_s12 }
  0x19   :  { %p89_p11 = scmp.ne.s32.totalorder %s26_s12, %s88_s30  ;;  %p94_p13 = scmp.lt.s32.totalorder %s88_s30, %s88_s30 }
  0x1b   :  { %p95_p0 = por %p94_p13, %p93_p12 }
  0x1d   :  { %p96_p1 = pnand %p95_p0, %p89_p11 }
  0x1f   :  { %99 = shalt.err (!%p96_p1)
}
  0x20   :  { %28 = dma.hbm_to_vmem [thread:$0]  %s149_s1, 256, %s26_s12, [#allocation5]  }
  0x21   :  { %100 = dma.done.wait [#allocation3], 256  }
  0x22   :  { %101 = vsyncadd [#allocation3], 4294967040 }
  0x23   :  { %102 = dma.done.wait [#allocation5], 256  }
  0x24   :  { %103 = vsyncadd [#allocation5], 4294967040  ;;  %v35_v0 = vld [vmem:[#allocation2] sm:$0xff]  ;;  %v36_v1 = vld [vmem:[#allocation2 + $0x8] sm:$0xff]  ;;  %vm46_vm0 = vcmask 7168  }
  0x25   :  { %v37_v2 = vld [vmem:[#allocation4] sm:$0xff]  ;;  %v38_v3 = vld [vmem:[#allocation4 + $0x8] sm:$0xff] }
  0x26   :  { %v39_v4 = vsub.f32 %v35_v0, %v37_v2  ;;  %v40_v5 = vsub.f32 %v36_v1, %v38_v3 }
  0x28   :  { %v41_v6 = vmul.f32 %v39_v4, %v39_v4  ;;  %v42_v7 = vmul.f32 %v40_v5, %v40_v5 }
  0x2a   :  { %v43_v8 = vadd.f32 %v42_v7, %v41_v6 }
  0x2c   :  { %44 = vadd.xlane.f32.xlu0 %v43_v8 }
  0xb9   :  { %v45_v9 = vpop.xlane.xlu0 %44 }
  0xba   :  { %47 = vst.msk [vmem:[%s150_s2] sm:$0xff] %vm46_vm0, %v45_v9 }
  0xbb   :  { %52 = vsyncpa [#allocation3], 1 }
  0xbc   :  { %53 = vsyncpa [#allocation5], 1 }

</bundles_post_ra>
